<compile_context>
chip_gen: v6e
topology: v6e:2x2x1
jax: 0.10.0
libtpu: 0.0.40
codegen_flags: <defaults>
</compile_context>

<pallas_src>
import functools

import jax
import jax.numpy as jnp
from jax import lax
from jax.experimental import pallas as pl
from jax.experimental.pallas import tpu as pltpu

EMBED_DIM = 8
SEQ_LEN = 8
BATCH = 4


def magic_kernel(x_ref, wqkv_ref, bqkv_ref, o_ref, *, d):
    x = x_ref[...]                                            # (S, D) f32

    # Fused QKV projection: one MXU pass + one broadcast bias add.
    qkv = (
        jnp.dot(x, wqkv_ref[...], preferred_element_type=jnp.float32)
        + bqkv_ref[...]
    )                                                         # (S, 3D)
    q = qkv[:, :d]
    k = qkv[:, d:2 * d]
    v = qkv[:, 2 * d:]

    # attn = Q @ K^T: contract last dims directly, no materialized transpose.
    attn = lax.dot_general(
        q, k, (((1,), (1,)), ((), ())), preferred_element_type=jnp.float32
    )                                                         # (S, S)

    # out = attn @ V
    o_ref[...] = jnp.dot(
        attn, v, preferred_element_type=jnp.float32
    ).astype(o_ref.dtype)


def magic_forward(x, wq, bq, wk, bk, wv, bv):
    """x may be (S, D) (exact PyTorch forward) or (B, S, D) (batched)."""
    squeeze = x.ndim == 2
    if squeeze:
        x = x[None]
    B, S, D = x.shape

    # Concatenate (and pre-transpose) weights/biases in the wrapper so the
    # kernel sees a single (D, 3D) weight and a single (1, 3D) bias.
    wqkv = jnp.concatenate([wq.T, wk.T, wv.T], axis=1)        # (D, 3D)
    bqkv = jnp.concatenate([bq, bk, bv], axis=1)              # (1, 3D)

    out = pl.pallas_call(
        functools.partial(magic_kernel, d=D),
        out_shape=jax.ShapeDtypeStruct((B, S, D), jnp.float32),
        grid=(B,),
        in_specs=[
            pl.BlockSpec((None, S, D), lambda b: (b, 0, 0)),  # per-sequence x
            pl.BlockSpec((D, 3 * D), lambda b: (0, 0)),       # shared Wqkv
            pl.BlockSpec((1, 3 * D), lambda b: (0, 0)),       # shared bqkv
        ],
        out_specs=pl.BlockSpec((None, S, D), lambda b: (b, 0, 0)),
        compiler_params=pltpu.CompilerParams(
            dimension_semantics=("parallel",),                # v7x: both TCs
        ),
    )(x, wqkv, bqkv)

    return out[0] if squeeze else out


def init_params(key):
    # Deterministic synthetic init mimicking nn.Linear's uniform(-1/sqrt(in), 1/sqrt(in)).
    bound = 1.0 / jnp.sqrt(jnp.float32(EMBED_DIM))
    keys = jax.random.split(key, 8)
    u = lambda k, shape: jax.random.uniform(k, shape, jnp.float32, -bound, bound)
    return {
        # self.linear exists in __init__ but is unused in forward (kept for parity).
        "linear_w": u(keys[0], (EMBED_DIM, EMBED_DIM)),
        "linear_b": u(keys[1], (1, EMBED_DIM)),
        "wq": u(keys[2], (EMBED_DIM, EMBED_DIM)),
        "bq": u(keys[3], (1, EMBED_DIM)),
        "wk": u(keys[4], (EMBED_DIM, EMBED_DIM)),
        "bk": u(keys[5], (1, EMBED_DIM)),
        "wv": u(keys[6], (EMBED_DIM, EMBED_DIM)),
        "bv": u(keys[7], (1, EMBED_DIM)),
    }


def reference_forward(x, p):
    q = x @ p["wq"].T + p["bq"]
    k = x @ p["wk"].T + p["bk"]
    v = x @ p["wv"].T + p["bv"]
    attn = jnp.einsum("...qd,...kd->...qk", q, k)
    return jnp.einsum("...qk,...kd->...qd", attn, v)


if __name__ == "__main__":
    key = jax.random.PRNGKey(0)
    k_x, k_p = jax.random.split(key)
    p = init_params(k_p)

    # Batched path: B independent (S, D) sequences in one pallas_call.
    xb = jax.random.normal(k_x, (BATCH, SEQ_LEN, EMBED_DIM), jnp.float32)
    outb = magic_forward(xb, p["wq"], p["bq"], p["wk"], p["bk"], p["wv"], p["bv"])
    outb = jax.block_until_ready(outb)
    refb = reference_forward(xb, p)
    assert outb.shape == (BATCH, SEQ_LEN, EMBED_DIM)
    assert jnp.allclose(outb, refb, atol=1e-4, rtol=1e-4)

    # Single-sequence path, identical to the PyTorch module's 2-D forward.
    x = xb[0]
    out = magic_forward(x, p["wq"], p["bq"], p["wk"], p["bk"], p["wv"], p["bv"])
    out = jax.block_until_ready(out)
    ref = reference_forward(x, p)
    assert out.shape == (SEQ_LEN, EMBED_DIM)
    assert jnp.allclose(out, ref, atol=1e-4, rtol=1e-4)

    print("KERNEL_OK")
</pallas_src>

<mosaic_0001>
module attributes {stable_mosaic.version = 11 : i64} {
  func.func @magic_kernel(%arg0: i32, %arg1: memref<1x8x8xf32, #tpu.memory_space<vmem>>, %arg2: memref<8x24xf32, #tpu.memory_space<vmem>>, %arg3: memref<1x24xf32, #tpu.memory_space<vmem>>, %arg4: memref<1x8x8xf32, #tpu.memory_space<vmem>>) attributes {dimension_semantics = [#tpu.dimension_semantics<parallel>], iteration_bounds = array<i64: 4>, scalar_prefetch = 0 : i64, scratch_operands = 0 : i64, tpu.core_type = #tpu.core_type<tc>, window_params = [{transform_indices = @transform_0, window_bounds = array<i64: 1, 8, 8>}, {pipeline_mode = #tpu.pipeline_mode<synchronous>, transform_indices = @transform_1, window_bounds = array<i64: 8, 24>}, {pipeline_mode = #tpu.pipeline_mode<synchronous>, transform_indices = @transform_2, window_bounds = array<i64: 1, 24>}, {transform_indices = @transform_3, window_bounds = array<i64: 1, 8, 8>}]} {
    %c0 = arith.constant 0 : index
    %c0_0 = arith.constant 0 : index
    %c0_1 = arith.constant 0 : index
    %0 = vector.load %arg1[%c0, %c0_0, %c0_1] : memref<1x8x8xf32, #tpu.memory_space<vmem>>, vector<1x8x8xf32>
    %1 = vector.shape_cast %0 : vector<1x8x8xf32> to vector<8x8xf32>
    %c0_2 = arith.constant 0 : index
    %c0_3 = arith.constant 0 : index
    %2 = vector.load %arg2[%c0_2, %c0_3] : memref<8x24xf32, #tpu.memory_space<vmem>>, vector<8x24xf32>
    %cst = arith.constant dense<0.000000e+00> : vector<8x24xf32>
    %3 = tpu.matmul %1, %2, %cst {dimension_numbers = #tpu.dot_dimension_numbers<[1], [0], [0], [1], [0, 0, 1, 1], [], []>} : vector<8x8xf32>, vector<8x24xf32>, vector<8x24xf32> -> vector<8x24xf32>
    %c0_4 = arith.constant 0 : index
    %c0_5 = arith.constant 0 : index
    %4 = vector.load %arg3[%c0_4, %c0_5] : memref<1x24xf32, #tpu.memory_space<vmem>>, vector<1x24xf32>
    %5 = vector.broadcast %4 : vector<1x24xf32> to vector<8x24xf32>
    %6 = arith.addf %3, %5 : vector<8x24xf32>
    %7 = vector.extract_strided_slice %6 {offsets = [0, 0], sizes = [8, 8], strides = [1, 1]} : vector<8x24xf32> to vector<8x8xf32>
    %8 = vector.extract_strided_slice %6 {offsets = [0, 8], sizes = [8, 8], strides = [1, 1]} : vector<8x24xf32> to vector<8x8xf32>
    %9 = vector.extract_strided_slice %6 {offsets = [0, 16], sizes = [8, 8], strides = [1, 1]} : vector<8x24xf32> to vector<8x8xf32>
    %cst_6 = arith.constant dense<0.000000e+00> : vector<8x8xf32>
    %10 = tpu.matmul %7, %8, %cst_6 {dimension_numbers = #tpu.dot_dimension_numbers<[1], [1], [0], [0], [0, 0, 1, 0], [], []>} : vector<8x8xf32>, vector<8x8xf32>, vector<8x8xf32> -> vector<8x8xf32>
    %cst_7 = arith.constant dense<0.000000e+00> : vector<8x8xf32>
    %11 = tpu.matmul %10, %9, %cst_7 {dimension_numbers = #tpu.dot_dimension_numbers<[1], [0], [0], [1], [0, 0, 1, 1], [], []>} : vector<8x8xf32>, vector<8x8xf32>, vector<8x8xf32> -> vector<8x8xf32>
    %c0_8 = arith.constant 0 : index
    %c0_9 = arith.constant 0 : index
    %c0_10 = arith.constant 0 : index
    %12 = vector.load %arg4[%c0_8, %c0_9, %c0_10] : memref<1x8x8xf32, #tpu.memory_space<vmem>>, vector<1x8x8xf32>
    %13 = vector.shape_cast %12 : vector<1x8x8xf32> to vector<8x8xf32>
    %14 = vector.shape_cast %11 : vector<8x8xf32> to vector<1x8x8xf32>
    tpu.vector_store %arg4[%c0_8, %c0_9, %c0_10], %14 {strides = array<i32>} : memref<1x8x8xf32, #tpu.memory_space<vmem>>, vector<1x8x8xf32>,
    return
  }
  func.func @transform_0(%arg0: i32) -> (i32, i32, i32) {
    %c0_i32 = arith.constant 0 : i32
    %c0_i32_0 = arith.constant 0 : i32
    %c0_i32_1 = arith.constant 0 : i32
    return %arg0, %c0_i32, %c0_i32_0 : i32, i32, i32
  }
  func.func @transform_1(%arg0: i32) -> (i32, i32) {
    %c0_i32 = arith.constant 0 : i32
    %c0_i32_0 = arith.constant 0 : i32
    %c0_i32_1 = arith.constant 0 : i32
    return %c0_i32, %c0_i32_0 : i32, i32
  }
  func.func @transform_2(%arg0: i32) -> (i32, i32) {
    %c0_i32 = arith.constant 0 : i32
    %c0_i32_0 = arith.constant 0 : i32
    %c0_i32_1 = arith.constant 0 : i32
    return %c0_i32, %c0_i32_0 : i32, i32
  }
  func.func @transform_3(%arg0: i32) -> (i32, i32, i32) {
    %c0_i32 = arith.constant 0 : i32
    %c0_i32_0 = arith.constant 0 : i32
    %c0_i32_1 = arith.constant 0 : i32
    return %arg0, %c0_i32, %c0_i32_0 : i32, i32, i32
  }
}

</mosaic_0001>

<bundles_post_ra>
// kernel: tpu_custom_call.1
= control target key start
LH: loop header
LB: loop body
LE: loop exit
PB: predicated region body
PF: predicated region fallthrough
CT: control target
= control target key end

     0   :  { %8 = vsyncpa [#allocation3], 0  ;;  %s970_s0 = inlined_call_operand.hbm [shape: f32[4,8,8], index: 0, kind: input, shape index: {}]   ;;  %s971_s1 = inlined_call_operand.hbm [shape: f32[8,24], index: 1, kind: input, shape index: {}]   ;;  %s972_s2 = inlined_call_operand.vmem [shape: f32[1,24], index: 2, kind: input, shape index: {}]   ;;  %s973_s3 = inlined_call_operand.hbm [shape: f32[4,8,8], index: 3, kind: output, shape index: {}]  }
   0x1   :  { %10 = vsyncpa [#allocation3 + $0x1], 0 }
   0x2   :  { %11 = vsyncpa [#allocation6], 0 }
   0x3   :  { %12 = vsyncpa [#allocation4], 0 }
   0x4   :  { %14 = vsyncpa [#allocation4 + $0x1], 0  ;;  %s782_s12 = smov 0   ;;  %s784_s13 = smov 0  }
   0x5   :  { %s786_s14 = smov 0   ;;  %s788_s15 = smov 0  }
   0x6 LB: > { %s803_s16 = sadd.s32 4294967295, %s753_s15   ;;  %s530_s17 = sadd.s32 4294967294, %s753_s15   ;;  %s753_s15 = sphi %s788_s15, %s995_s15   ;;  %s749_s14 = sphi %s786_s14, %s994_s14   ;;  %s745_s13 = sphi %s784_s13, %s993_s13   ;;  %s741_s12 = sphi %s782_s12, %s992_s12  }
   0x7   : > { %p40_p0 = scmp.ne.s32.totalorder %s745_s13, %s741_s12  ;;  %p974_p1 = scmp.eq.s32.totalorder %s803_s16, 0 }
   0x8   : > { %p112_p3 = scmp.eq.s32.totalorder %s530_s17, 3  ;;  %p531_p5 = scmp.ge.s32.totalorder %s753_s15, 1 }
   0x9   : > { %p812_p4 = por %p974_p1, %p40_p0  ;;  %p119_p7 = scmp.lt.s32.totalorder %s753_s15, 5 }
   0xa   : > { %p817_p6 = por %p112_p3, %p40_p0  ;;  %s755_s21 = smov [#allocation5]  }
   0xb   : > { %s978_s18 = scalar_select %p812_p4, 1, 0 }
   0xc   : > { %s979_s19 = scalar_select %p817_p6, 1, 0 }
   0xd   : > { %p822_p8 = pnand %p531_p5, %p119_p7  ;;  %s132_s22 = sshll.u32 %s755_s21, 4  ;;  %s133_s22 = int_to_ptr.vmem [resolvable:$true] %s132_s22 }
   0xe   : > { %s829_s23 = sadd.s32 1, %s753_s15   ;;  %s27_s27 = sadd.s32 1, %s749_s14 }
   0xf   : > { %s980_s20 = scalar_select %p822_p8, 1, 0 }
  0x10   : > { %p578_p9 = pneg %p822_p8  ;;  %s24_s25 = ssub.s32 %s753_s15, %s829_s23 }
  0x11   : > { %p839_p11 = scmp.eq.s32.totalorder %s24_s25, 0  ;;  %p34_p12 = scmp.ne.s32.totalorder %s749_s14, %s745_s13 }
  0x12   : > { %p833_p10 = pnand %p578_p9, %p974_p1  ;;  %s642_s28 = scalar_lea.vmem %s133_s22, 128 }
  0x13   : > { %p643_p0 = scmp.ne.s32.totalorder %s133_s22, %s642_s28  ;;  %p650_p7 = scmp.lt.s32.totalorder %s133_s22, %s133_s22 }
  0x14   : > { %p633_p13 = pneg %p833_p10  ;;  %p651_p2 = scmp.lt.s32.totalorder %s642_s28, %s642_s28 }
  0x16   : > { %p645_p3 = pnand %p643_p0, %p633_p13  ;;  %p652_p9 = por %p651_p2, %p650_p7 }
  0x18   : > { %p646_p5 = pneg %p645_p3 }
  0x1a   : > { %p653_p1 = pnand %p652_p9, %p646_p5 }
  0x1c   : > { %656 = shalt.err (!%p653_p1)
}
  0x1d   : > { %581 = dma.hbm_to_vmem [thread:$0]  (!%p833_p10), %s971_s1, 128, %s133_s22, [#allocation6]  }
  0x1e   : > { %s856_s4 = scalar_select %p839_p11, %s749_s14, %s27_s27  }
  0x1f   : > { %p35_p1 = scmp.eq.s32.totalorder %s753_s15, 0  ;;  %p983_p2 = scmp.eq.s32.totalorder %s803_s16, 3 }
  0x20   : > { %p591_p0 = scmp.lt.s32.totalorder %s753_s15, 4  ;;  %s146_s6 = sand.u32 1, %s749_s14  }
  0x21   : > { %p864_p13 = por %p983_p2, %p34_p12  ;;  %p36_p3 = por %p35_p1, %p34_p12 }
  0x22   : > { %s534_s7 = sshll.u32 %s146_s6, 3  ;;  %s535_s8 = sshll.u32 %s753_s15, 7 }
  0x23   : > { %s984_s5 = scalar_select %p864_p13, 1, 0 }
  0x24   : > { %s877_s11 = scalar_lea.hbm %s970_s0, %s535_s8  ;;  %s150_s17 = scalar_lea.vmem [#allocation2], %s534_s7 }
  0x25   : > { %s157_s21 = sshll.u32 %s150_s17, 4  ;;  %p879_p10 = pnand %p591_p0, %p36_p3  ;;  %s158_s21 = int_to_ptr.vmem [resolvable:$true] %s157_s21 }
  0x26   : > { %s147_s24 = scalar_lea.sflag [#allocation3], %s146_s6  ;;  %s657_s25 = scalar_lea.hbm %s877_s11, 128 }
  0x27   : > { %p658_p11 = scmp.ne.s32.totalorder %s877_s11, %s657_s25  ;;  %p659_p12 = pneg %p879_p10 }
  0x28   : > { %s662_s28 = scalar_lea.hbm %s970_s0, 512  ;;  %p663_p9 = scmp.lt.s32.totalorder %s877_s11, %s970_s0 }
  0x29   : > { %p660_p5 = pnand %p659_p12, %p658_p11  ;;  %p664_p1 = scmp.lt.s32.totalorder %s662_s28, %s657_s25 }
  0x2b   : > { %p661_p7 = pneg %p660_p5  ;;  %p665_p2 = por %p664_p1, %p663_p9 }
  0x2d   : > { %p666_p0 = pnand %p665_p2, %p661_p7 }
  0x2f   : > { %669 = shalt.err (!%p666_p0)
}
  0x30   : > { %s670_s7 = scalar_lea.vmem %s158_s21, 128  ;;  %s756_s6 = smov [#allocation2]  }
  0x31   : > { %p671_p3 = scmp.ne.s32.totalorder %s158_s21, %s670_s7  ;;  %s675_s8 = sshll.u32 %s756_s6, 4  ;;  %s676_s8 = int_to_ptr.vmem [resolvable:$false] %s675_s8 }
  0x32   : > { %s677_s9 = scalar_lea.vmem %s676_s8, 256  ;;  %p678_p11 = scmp.lt.s32.totalorder %s158_s21, %s676_s8 }
  0x33   : > { %p673_p6 = pnand %p671_p3, %p659_p12  ;;  %p679_p5 = scmp.lt.s32.totalorder %s677_s9, %s670_s7 }
  0x35   : > { %p674_p13 = pneg %p673_p6  ;;  %p680_p4 = por %p679_p5, %p678_p11 }
  0x37   : > { %p681_p8 = pnand %p680_p4, %p674_p13 }
  0x39   : > { %684 = shalt.err (!%p681_p8)
}
  0x3a   : > { %585 = dma.hbm_to_vmem [thread:$0]  (!%p879_p10), %s877_s11, 128, %s158_s21, %s147_s24  }
  0x3b   : > { %p986_p7 = scmp.ne.s32.totalorder %s980_s20, 0 }
  0x3c   : > { %s900_s10 = sand.u32 (!%p986_p7), 1, %s745_s13   ;;  %p987_p4 = scmp.ne.s32.totalorder (!%p986_p7), %s978_s18, 0 }
  0x3d   : > { %166 = sbr.rel (%p986_p7) target bundleno = 787 (0x313), region = 32  ;;  %s537_s17 = sshll.u32 (!%p986_p7), %s900_s10, 3 }
  0x3e   : > { %s169_s25 = scalar_lea.sflag (!%p986_p7), [#allocation3], %s900_s10  ;;  %s172_s26 = scalar_lea.vmem (!%p986_p7), [#allocation2], %s537_s17 }
  0x42   : > { %728 = dma.done.wait (%p987_p4), %s169_s25, 128  }
  0x43   : > { %730 = vsyncadd (%p987_p4), %s169_s25, 4294967168  ;;  %p988_p6 = scmp.eq.s32.totalorder %s803_s16, 0 }
  0x45   : > { %732 = dma.done.wait (%p988_p6), [#allocation6], 128   ;;  %p989_p8 = pmov %p988_p6 }
  0x46   : > { %v757_v0 = vmov 0.0   ;;  %vm758_vm0 = vmmov 0   ;;  %vm208_vm1 = vcmask 64512   ;;  %v200_v1 = vld [vmem:[#allocation5] sm:$0xff]  ;;  %v199_v2 = vld [vmem:[%s172_s26] sm:$0xff]  ;;  %s759_s11 = smov 120  }
  0x47   : > { %734 = vsyncadd (%p989_p8), [#allocation6], 4294967168  ;;  %555 = vmatprep.subr.mxu0 %v757_v0  ;;  %557 = vmatprep.mubr.msk.f32.mxu0 %vm758_vm0, %v757_v0  ;;  %v540_v3 = vld [vmem:[%s972_s2] ss:$0 sm:$0xff]  ;;  %s760_s21 = smov 112   ;;  %s546_s22 = sshll.u32 %s803_s16, 7 }
  0x48   : > { %560 = vmatprep.subr.mxu1 %v757_v0  ;;  %562 = vmatprep.mubr.msk.f32.mxu1 %vm758_vm0, %v757_v0  ;;  %s198_s24 = scalar_lea.vmem [#allocation7], %s537_s17  ;;  %s927_s30 = scalar_lea.hbm %s973_s3, %s546_s22 }
  0x49   : > { %556 = vmatpush3.msra.mxu0 %v200_v1  ;;  %s450_s27 = sshll.u32 %s198_s24, 4  ;;  %s437_s7 = scalar_lea.sflag [#allocation4], %s900_s10  ;;  %s929_s27 = int_to_ptr.vmem [resolvable:$true] %s450_s27 }
  0x4a   : > { %558 = vmatmul.mubr.msk.f32.vlgmr.msra.gmra.mxu0 %vm208_vm1, %v199_v2  ;;  %565 = vmatprep.subr.mxu0 %v757_v0  ;;  %s685_s6 = scalar_lea.vmem %s929_s27, 128  ;;  %p990_p10 = scmp.ne.s32.totalorder %s984_s5, 0 }
  0x4b   : > { %567 = vmatprep.mubr.msk.f32.mxu0 %vm758_vm0, %v757_v0  ;;  %p686_p13 = scmp.ne.s32.totalorder %s929_s27, %s685_s6  ;;  %s761_s16 = smov [#allocation7]  }
  0x4c   : > { %s689_s8 = sshll.u32 %s761_s16, 4  ;;  %s690_s8 = int_to_ptr.vmem [resolvable:$false] %s689_s8 }
  0x4d   : > { %p687_p12 = pnand %p686_p13, %p990_p10  ;;  %s691_s9 = scalar_lea.vmem %s690_s8, 256 }
  0x4e   : > { %p692_p1 = scmp.lt.s32.totalorder %s929_s27, %s690_s8  ;;  %p693_p2 = scmp.lt.s32.totalorder %s691_s9, %s685_s6 }
  0x4f   : > { %p688_p9 = pneg %p687_p12 }
  0x50   : > { %p694_p0 = por %p693_p2, %p692_p1 }
  0x52   : > { %p695_p3 = pnand %p694_p0, %p688_p9 }
 0x10a   : > { %v278_v4 = vpop.f32.mrf.mxu0 }
 0x10b   : > { %v279_v5 = vadd.f32 %v540_v3, %v278_v4 }
 0x10c   : > { %v559_v6 = vpop.f32.mrf.mxu0 }
 0x10d   : > { %283 = vrot.lane.b32.xlu0 %v279_v5, %s759_s11 }
 0x111   : > { %359 = vrot.lane.b32.xlu0 %v279_v5, %s760_s21 }
 0x17f   : > { %v284_v7 = vpop.permute.xlu0 %283 }
 0x180   : > { %561 = vmatpush3.xpose.msk.msra.mxu1 %vm208_vm1, %v284_v7 }
 0x183   : > { %563 = vmatmul.mubr.msk.f32.vlgmr.msra.gmra.mxu1 %vm208_vm1, %v279_v5  ;;  %v360_v8 = vpop.permute.xlu0 %359 }
 0x184   : > { %566 = vmatpush3.msra.mxu0 %v360_v8 }
 0x243   : > { %v355_v9 = vpop.f32.mrf.mxu1 }
 0x244   : > { %568 = vmatmul.mubr.msk.f32.vlgmr.msra.gmra.mxu0 %vm208_vm1, %v355_v9 }
 0x245   : > { %v564_v10 = vpop.f32.mrf.mxu1 }
 0x304   : > { %v431_v11 = vpop.f32.mrf.mxu0 }
 0x305   : > { %435 = vst.msk [vmem:[%s198_s24] sm:$0xff] %vm208_vm1, %v431_v11 }
 0x306   : > { %v569_v12 = vpop.f32.mrf.mxu0 }
 0x307   : > { %698 = shalt.err (!%p695_p3)
}
 0x308   : > { %s699_s17 = scalar_lea.hbm %s927_s30, 128  ;;  %s703_s26 = scalar_lea.hbm %s973_s3, 512 }
 0x309   : > { %p700_p11 = scmp.ne.s32.totalorder %s927_s30, %s699_s17  ;;  %p704_p4 = scmp.lt.s32.totalorder %s927_s30, %s973_s3 }
 0x30a   : > { %p705_p6 = scmp.lt.s32.totalorder %s703_s26, %s699_s17 }
 0x30b   : > { %p701_p5 = pnand %p700_p11, %p990_p10 }
 0x30c   : > { %p706_p8 = por %p705_p6, %p704_p4 }
 0x30d   : > { %p702_p7 = pneg %p701_p5 }
 0x30f   : > { %p707_p13 = pnand %p706_p8, %p702_p7 }
 0x311   : > { %710 = shalt.err (!%p707_p13)
}
 0x312   : > { %576 = dma.vmem_to_hbm [thread:$0]  (%p990_p10), %s929_s27, 128, %s927_s30, %s437_s7  }
 0x313 PF: > { %p593_p12 = scmp.ge.s32.totalorder %s753_s15, 2  ;;  %s462_s11 = sand.u32 1, %s741_s12  }
 0x314   : > { %p991_p9 = scmp.ne.s32.totalorder %s979_s19, 0  ;;  %s463_s21 = scalar_lea.sflag [#allocation4], %s462_s11 }
 0x316   : > { %p587_p1 = pnand %p593_p12, %p991_p9 }
 0x318   : > { %p588_p2 = pneg %p587_p1 }
 0x31a   : > { %736 = dma.done.wait (%p588_p2), %s463_s21, 128  }
 0x31b   : > { %738 = vsyncadd (%p588_p2), %s463_s21, 4294967168  ;;  %p17_p0 = scmp.ge.s32.totalorder %s829_s23, 6   ;;  %s992_s12 = smov %s745_s13 }
 0x31c   : > { %s993_s13 = smov %s749_s14  ;;  %s994_s14 = smov %s856_s4 }
 0x31d   : > { %s995_s15 = smov %s829_s23  ;;  %19 = sbr.rel (!%p17_p0) target bundleno = 6 (0x6), region = 81 }
 0x322   :  { %468 = vsyncpa [#allocation3], 1 }
 0x323   :  { %470 = vsyncpa [#allocation3 + $0x1], 1 }
 0x324   :  { %471 = vsyncpa [#allocation6], 1 }
 0x325   :  { %472 = vsyncpa [#allocation4], 1 }
 0x326   :  { %474 = vsyncpa [#allocation4 + $0x1], 1 }

</bundles_post_ra>
